<compile_context>
chip_gen: v6e
topology: v6e:2x2x1
jax: 0.10.0
libtpu: 0.0.40
codegen_flags: <defaults>
</compile_context>

<pallas_src>
import functools

import jax
import jax.numpy as jnp
from jax.experimental import pallas as pl
from jax.experimental.pallas import tpu as pltpu


# ----------------------------- helpers ---------------------------------------
def _round_up(v, m):
    return ((v + m - 1) // m) * m


def _pad_to(arr, shape, dtype):
    """Zero-pad `arr` up to `shape` and cast to `dtype` (no-op when already there)."""
    arr = arr.astype(dtype)
    if tuple(arr.shape) == tuple(shape):
        return arr
    out = jnp.zeros(shape, dtype)
    return out.at[tuple(slice(0, s) for s in arr.shape)].set(arr)


# ----------------------------- Pallas kernel ---------------------------------
def fused_gcn_kernel(a_ref, x_ref, w1_ref, b1_ref, w2_ref, b2_ref, out_ref,
                     *, layer1_ax_first, layer2_ax_first):
    """Fused 2-layer GCN on a chunk of graphs:
         out[b] = A[b] @ relu(A[b] @ X[b] @ W1 + b1) @ W2 + b2
    A / X / W arrive in the compute dtype (bf16 or f32); all MXU accumulation
    and everything after the first contraction stays in f32.  The hidden
    activation never leaves VMEM/vregs.
    """
    f32 = jnp.float32
    a = a_ref[...]                      # [Bc, N, N]   compute dtype
    x = x_ref[...]                      # [Bc, N, Fin] compute dtype
    bc, n_p, _ = a.shape

    def mm_feat(t, w):                  # [Bc,N,F] @ [F,G] -> [Bc,N,G] (f32 acc)
        f = t.shape[-1]
        t2 = t.reshape(bc * n_p, f)     # leading-dim collapse only (no lane move)
        y = jnp.dot(t2, w, preferred_element_type=f32)
        return y.reshape(bc, n_p, w.shape[-1])

    def mm_adj(adj, t):                 # [Bc,N,N] @ [Bc,N,F] -> [Bc,N,F] (f32 acc)
        return jnp.einsum('bnm,bmf->bnf', adj, t, preferred_element_type=f32)

    b1 = b1_ref[...][None]              # [1,1,H]  f32
    b2 = b2_ref[...][None]              # [1,1,Fo] f32

    # ---- layer 1: h = relu(A @ X @ W1 + b1) ----
    if layer1_ax_first:                 # (A @ X) @ W1
        h = mm_feat(mm_adj(a, x), w1_ref[...].astype(f32))
    else:                               # A @ (X @ W1)
        h = mm_adj(a.astype(f32), mm_feat(x, w1_ref[...]))
    h = jnp.maximum(h + b1, 0.0)
    # NOTE(correctness, load-bearing): padded (zero) node rows of A/X give
    # h = relu(b1) != 0 on those rows.  They never contaminate real output
    # rows only because layer 2 multiplies by A whose padded *columns* are
    # zero.  Do not reorder layer 2 to skip the A multiply on those rows.

    # ---- layer 2: y = A @ H @ W2 + b2 ----  (intermediates stay f32; at
    # molecule-scale blocks the kernel is DMA/step-overhead bound, so the f32
    # second matmul is free and avoids a second bf16 rounding of the hidden.)
    a32 = a.astype(f32)
    w2 = w2_ref[...].astype(f32)
    if layer2_ax_first:                 # (A @ H) @ W2
        y = mm_feat(mm_adj(a32, h), w2)
    else:                               # A @ (H @ W2)
        y = mm_adj(a32, mm_feat(h, w2))
    out_ref[...] = (y + b2).astype(out_ref.dtype)


# ----------------------------- parameter prep (hoisted) -----------------------
def prepare_params(params, *, compute_dtype=jnp.bfloat16):
    """Pad/cast the weights ONCE (out of the per-forward path).
    Feature (lane) dims pad to multiples of 128; padded rows/cols are zero."""
    f_in, h_dim = params["w1"].shape
    f_out = params["w2"].shape[1]
    f_in_p, h_p, f_out_p = (_round_up(d, 128) for d in (f_in, h_dim, f_out))
    return {
        "w1": _pad_to(params["w1"], (f_in_p, h_p), compute_dtype),
        "b1": _pad_to(params["b1"].reshape(1, -1), (1, h_p), jnp.float32),
        "w2": _pad_to(params["w2"], (h_p, f_out_p), compute_dtype),
        "b2": _pad_to(params["b2"].reshape(1, -1), (1, f_out_p), jnp.float32),
        "dims": (f_in, h_dim, f_out),
        "compute_dtype": jnp.dtype(compute_dtype),
    }


# ----------------------------- kernel wrapper ---------------------------------
def gcn2_fused(a_norm, x, prepared, *, out_dtype=jnp.float32):
    """Fused 2-layer GCN over a batch of graphs.

    a_norm:   [B, N, N] f32 dense normalized adjacency (one per graph).
    x:        [B, N, F_in] f32 node features.
    prepared: output of prepare_params().
    Returns   [B, N, output_dim] (out_dtype).
    """
    b, n, f_in = x.shape
    cdt = prepared["compute_dtype"]
    f_in_l, h_dim, f_out = prepared["dims"]
    assert f_in == f_in_l, "feature dim mismatch vs prepared params"
    f_in_p, h_p = prepared["w1"].shape
    f_out_p = prepared["w2"].shape[1]

    # Padding policy (perf review): node/sublane axis pads only to the dtype's
    # sublane packing (8 for f32, 16 for bf16); only lane/feature axes pad to
    # 128.  Full-array blocks satisfy the (8,128) BlockSpec rule and Mosaic
    # pads the VMEM layout internally, so numerics are unchanged while HBM
    # traffic and zero MXU work drop 10-100x vs padding N to 128.
    sublane = 8 if jnp.dtype(cdt).itemsize >= 4 else 16
    n_p = _round_up(n, sublane)

    a_p = _pad_to(a_norm, (b, n_p, n_p), cdt)
    x_p = _pad_to(x, (b, n_p, f_in_p), cdt)

    # Batch chunking (perf review): fatten grid steps so the ~0.35us/step
    # overhead is amortized, but keep >=2 steps so v7x's two TensorCores each
    # get a shard.  TODO(synk): cap b_chunk for huge batches / large N so the
    # per-step A block stays well inside VMEM (and tile A over (row,k) with a
    # VMEM f32 accumulator, ~2x earlier on v7x's 64 MiB VMEM).
    if b >= 2 and b % 2 == 0:
        b_chunk = b // 2
    else:
        b_chunk = 1
    n_steps = b // b_chunk

    # Matmul ordering per layer chosen from the *padded* dims actually fed to
    # the MXU (contract through the smaller one).
    layer1_ax_first = f_in_p <= h_p
    layer2_ax_first = h_p <= f_out_p

    kernel = functools.partial(fused_gcn_kernel,
                               layer1_ax_first=layer1_ax_first,
                               layer2_ax_first=layer2_ax_first)

    # Cost hint for the XLA scheduler (padded dims = what the MXU executes).
    flops_l1 = (2 * n_p * n_p * (f_in_p if layer1_ax_first else h_p)
                + 2 * n_p * f_in_p * h_p)
    flops_l2 = (2 * n_p * n_p * (h_p if layer2_ax_first else f_out_p)
                + 2 * n_p * h_p * f_out_p)
    csize = jnp.dtype(cdt).itemsize
    bytes_accessed = (a_p.size * csize + x_p.size * csize
                      + prepared["w1"].size * csize
                      + prepared["w2"].size * csize
                      + prepared["b1"].size * 4 + prepared["b2"].size * 4
                      + b * n_p * f_out_p * jnp.dtype(out_dtype).itemsize)

    out_p = pl.pallas_call(
        kernel,
        out_shape=jax.ShapeDtypeStruct((b, n_p, f_out_p), out_dtype),
        grid_spec=pltpu.PrefetchScalarGridSpec(
            num_scalar_prefetch=0,
            grid=(n_steps,),   # <=2 fat steps; parallel across TCs on v7x
            in_specs=[
                pl.BlockSpec((b_chunk, n_p, n_p), lambda g: (g, 0, 0)),
                pl.BlockSpec((b_chunk, n_p, f_in_p), lambda g: (g, 0, 0)),
                # Weights/biases: constant block index -> stay resident in
                # VMEM across all grid steps (no re-DMA per step).
                pl.BlockSpec((f_in_p, h_p), lambda g: (0, 0)),
                pl.BlockSpec((1, h_p), lambda g: (0, 0)),
                pl.BlockSpec((h_p, f_out_p), lambda g: (0, 0)),
                pl.BlockSpec((1, f_out_p), lambda g: (0, 0)),
            ],
            out_specs=pl.BlockSpec((b_chunk, n_p, f_out_p),
                                   lambda g: (g, 0, 0)),
        ),
        compiler_params=pltpu.CompilerParams(
            dimension_semantics=("parallel",),        # megacore split on v7x
            vmem_limit_bytes=32 * 1024 * 1024,        # v7x-safe, tiny usage here
        ),
        cost_estimate=pl.CostEstimate(
            flops=int(b * (flops_l1 + flops_l2)),
            transcendentals=0,
            bytes_accessed=int(bytes_accessed),
        ),
    )(a_p, x_p, prepared["w1"], prepared["b1"], prepared["w2"], prepared["b2"])

    return out_p[:, :n, :f_out]


# ----------------------------- JAX glue ---------------------------------------
def normalized_adjacency(edge_index, num_nodes):
    """Dense GCN-normalized adjacency D^{-1/2}(A + I)D^{-1/2} from edge_index."""
    # TODO(synk): CSR/scalar-prefetch sparse path instead of a dense [N,N] A.
    src, dst = edge_index[0], edge_index[1]
    a = jnp.zeros((num_nodes, num_nodes), jnp.float32)
    a = a.at[dst, src].set(1.0)                        # messages flow src -> dst
    eye = jnp.eye(num_nodes, dtype=jnp.float32)
    a = jnp.maximum(a, eye)                            # self loops; diag stays 1.0
    deg = jnp.sum(a, axis=1)
    d_inv_sqrt = jnp.where(deg > 0, 1.0 / jnp.sqrt(deg), 0.0)
    return a * d_inv_sqrt[:, None] * d_inv_sqrt[None, :]


def cnn_model_forward(prepared, x, edge_index):
    """Forward pass matching CNNModel.forward(x, edge_index) for one graph.
    `prepared` comes from prepare_params() (weight padding is hoisted)."""
    a_norm = normalized_adjacency(edge_index, x.shape[0])
    return gcn2_fused(a_norm[None], x[None], prepared)[0]


def init_params(key, input_dim, hidden_dim, output_dim):
    k1, k2, k3, k4 = jax.random.split(key, 4)
    lim1 = (6.0 / (input_dim + hidden_dim)) ** 0.5
    lim2 = (6.0 / (hidden_dim + output_dim)) ** 0.5
    return {
        "w1": jax.random.uniform(k1, (input_dim, hidden_dim), jnp.float32,
                                 -lim1, lim1),
        "b1": jax.random.uniform(k3, (1, hidden_dim), jnp.float32, -0.1, 0.1),
        "w2": jax.random.uniform(k2, (hidden_dim, output_dim), jnp.float32,
                                 -lim2, lim2),
        "b2": jax.random.uniform(k4, (1, output_dim), jnp.float32, -0.1, 0.1),
    }


# ----------------------------- main -------------------------------------------
if __name__ == "__main__":
    key = jax.random.PRNGKey(0)
    k_x, k_p, k_xb = jax.random.split(key, 3)

    num_nodes, input_dim, hidden_dim, output_dim = 8, 16, 32, 8

    # Deterministic small graph: a ring with a few chords (undirected).
    src = jnp.array([0, 1, 2, 3, 4, 5, 6, 7, 0, 2], dtype=jnp.int32)
    dst = jnp.array([1, 2, 3, 4, 5, 6, 7, 0, 4, 6], dtype=jnp.int32)
    edge_index = jnp.stack(
        [jnp.concatenate([src, dst]), jnp.concatenate([dst, src])], axis=0
    )  # [2, 20], symmetric

    x = jax.random.normal(k_x, (num_nodes, input_dim), jnp.float32)
    params = init_params(k_p, input_dim, hidden_dim, output_dim)
    a_norm = normalized_adjacency(edge_index, num_nodes)

    # --- single graph, f32 compute: tight correctness check vs reference ---
    prep_f32 = prepare_params(params, compute_dtype=jnp.float32)
    y32 = cnn_model_forward(prep_f32, x, edge_index)
    y32 = jax.block_until_ready(y32)

    h_ref = jnp.maximum(a_norm @ x @ params["w1"] + params["b1"], 0.0)
    y_ref = a_norm @ h_ref @ params["w2"] + params["b2"]
    assert y32.shape == (num_nodes, output_dim)
    assert jnp.allclose(y32, y_ref, atol=1e-4, rtol=1e-4), "f32 path mismatch"

    # --- batched graphs, bf16 storage + f32 accumulation (perf config) ---
    batch = 4
    prep_bf16 = prepare_params(params, compute_dtype=jnp.bfloat16)
    xb = jax.random.normal(k_xb, (batch, num_nodes, input_dim), jnp.float32)
    a_b = jnp.broadcast_to(a_norm, (batch, num_nodes, num_nodes))
    yb = gcn2_fused(a_b, xb, prep_bf16)
    yb = jax.block_until_ready(yb)

    hb_ref = jnp.maximum(
        jnp.einsum("nm,bmf,fh->bnh", a_norm, xb, params["w1"]) + params["b1"], 0.0)
    yb_ref = jnp.einsum("nm,bmh,ho->bno", a_norm, hb_ref, params["w2"]) + params["b2"]
    assert yb.shape == (batch, num_nodes, output_dim)
    # bf16 A/X storage -> loose tolerance vs full-f32 reference.
    assert jnp.allclose(yb, yb_ref, atol=1e-1, rtol=1e-1), "bf16 batched mismatch"

    print("KERNEL_OK")
</pallas_src>

<mosaic_0001>
module attributes {stable_mosaic.version = 11 : i64} {
  func.func @fused_gcn_kernel(%arg0: i32, %arg1: memref<1x8x8xf32, #tpu.memory_space<vmem>>, %arg2: memref<1x8x128xf32, #tpu.memory_space<vmem>>, %arg3: memref<128x128xf32, #tpu.memory_space<vmem>>, %arg4: memref<1x128xf32, #tpu.memory_space<vmem>>, %arg5: memref<128x128xf32, #tpu.memory_space<vmem>>, %arg6: memref<1x128xf32, #tpu.memory_space<vmem>>, %arg7: memref<1x8x128xf32, #tpu.memory_space<vmem>>) attributes {dimension_semantics = [#tpu.dimension_semantics<parallel>], iteration_bounds = array<i64: 1>, scalar_prefetch = 0 : i64, scratch_operands = 0 : i64, tpu.core_type = #tpu.core_type<tc>, window_params = [{transform_indices = @transform_0, window_bounds = array<i64: 1, 8, 8>}, {transform_indices = @transform_1, window_bounds = array<i64: 1, 8, 128>}, {pipeline_mode = #tpu.pipeline_mode<synchronous>, transform_indices = @transform_2, window_bounds = array<i64: 128, 128>}, {pipeline_mode = #tpu.pipeline_mode<synchronous>, transform_indices = @transform_3, window_bounds = array<i64: 1, 128>}, {pipeline_mode = #tpu.pipeline_mode<synchronous>, transform_indices = @transform_4, window_bounds = array<i64: 128, 128>}, {pipeline_mode = #tpu.pipeline_mode<synchronous>, transform_indices = @transform_5, window_bounds = array<i64: 1, 128>}, {transform_indices = @transform_6, window_bounds = array<i64: 1, 8, 128>}]} {
    %c0 = arith.constant 0 : index
    %c0_0 = arith.constant 0 : index
    %c0_1 = arith.constant 0 : index
    %0 = vector.load %arg1[%c0, %c0_0, %c0_1] : memref<1x8x8xf32, #tpu.memory_space<vmem>>, vector<1x8x8xf32>
    %c0_2 = arith.constant 0 : index
    %c0_3 = arith.constant 0 : index
    %c0_4 = arith.constant 0 : index
    %1 = vector.load %arg2[%c0_2, %c0_3, %c0_4] : memref<1x8x128xf32, #tpu.memory_space<vmem>>, vector<1x8x128xf32>
    %c0_5 = arith.constant 0 : index
    %c0_6 = arith.constant 0 : index
    %2 = vector.load %arg4[%c0_5, %c0_6] : memref<1x128xf32, #tpu.memory_space<vmem>>, vector<1x128xf32>
    %3 = vector.shape_cast %2 : vector<1x128xf32> to vector<1x1x128xf32>
    %c0_7 = arith.constant 0 : index
    %c0_8 = arith.constant 0 : index
    %4 = vector.load %arg6[%c0_7, %c0_8] : memref<1x128xf32, #tpu.memory_space<vmem>>, vector<1x128xf32>
    %5 = vector.shape_cast %4 : vector<1x128xf32> to vector<1x1x128xf32>
    "tpu.trace_start"() <{level = 10 : i32, message = "bnm,bmf->bnf"}> : () -> ()
    %cst = arith.constant dense<0.000000e+00> : vector<1x8x128xf32>
    %6 = tpu.matmul %0, %1, %cst {dimension_numbers = #tpu.dot_dimension_numbers<[2], [1], [1], [2], [0, 0, 0, 1, 1, 2], [0], [0]>} : vector<1x8x8xf32>, vector<1x8x128xf32>, vector<1x8x128xf32> -> vector<1x8x128xf32>
    "tpu.trace_stop"() : () -> ()
    %c0_9 = arith.constant 0 : index
    %c0_10 = arith.constant 0 : index
    %7 = vector.load %arg3[%c0_9, %c0_10] : memref<128x128xf32, #tpu.memory_space<vmem>>, vector<128x128xf32>
    %8 = vector.shape_cast %6 : vector<1x8x128xf32> to vector<8x128xf32>
    %cst_11 = arith.constant dense<0.000000e+00> : vector<8x128xf32>
    %9 = tpu.matmul %8, %7, %cst_11 {dimension_numbers = #tpu.dot_dimension_numbers<[1], [0], [0], [1], [0, 0, 1, 1], [], []>} : vector<8x128xf32>, vector<128x128xf32>, vector<8x128xf32> -> vector<8x128xf32>
    %10 = vector.shape_cast %9 : vector<8x128xf32> to vector<1x8x128xf32>
    %11 = vector.broadcast %3 : vector<1x1x128xf32> to vector<1x8x128xf32>
    %12 = arith.addf %10, %11 : vector<1x8x128xf32>
    %cst_12 = arith.constant 0.000000e+00 : f32
    %13 = vector.broadcast %cst_12 : f32 to vector<1x8x128xf32>
    %14 = arith.maximumf %12, %13 : vector<1x8x128xf32>
    %c0_13 = arith.constant 0 : index
    %c0_14 = arith.constant 0 : index
    %15 = vector.load %arg5[%c0_13, %c0_14] : memref<128x128xf32, #tpu.memory_space<vmem>>, vector<128x128xf32>
    "tpu.trace_start"() <{level = 10 : i32, message = "bnm,bmf->bnf"}> : () -> ()
    %cst_15 = arith.constant dense<0.000000e+00> : vector<1x8x128xf32>
    %16 = tpu.matmul %0, %14, %cst_15 {dimension_numbers = #tpu.dot_dimension_numbers<[2], [1], [1], [2], [0, 0, 0, 1, 1, 2], [0], [0]>} : vector<1x8x8xf32>, vector<1x8x128xf32>, vector<1x8x128xf32> -> vector<1x8x128xf32>
    "tpu.trace_stop"() : () -> ()
    %17 = vector.shape_cast %16 : vector<1x8x128xf32> to vector<8x128xf32>
    %cst_16 = arith.constant dense<0.000000e+00> : vector<8x128xf32>
    %18 = tpu.matmul %17, %15, %cst_16 {dimension_numbers = #tpu.dot_dimension_numbers<[1], [0], [0], [1], [0, 0, 1, 1], [], []>} : vector<8x128xf32>, vector<128x128xf32>, vector<8x128xf32> -> vector<8x128xf32>
    %19 = vector.shape_cast %18 : vector<8x128xf32> to vector<1x8x128xf32>
    %20 = vector.broadcast %5 : vector<1x1x128xf32> to vector<1x8x128xf32>
    %21 = arith.addf %19, %20 : vector<1x8x128xf32>
    %c0_17 = arith.constant 0 : index
    %c0_18 = arith.constant 0 : index
    %c0_19 = arith.constant 0 : index
    %22 = vector.load %arg7[%c0_17, %c0_18, %c0_19] : memref<1x8x128xf32, #tpu.memory_space<vmem>>, vector<1x8x128xf32>
    tpu.vector_store %arg7[%c0_17, %c0_18, %c0_19], %21 {strides = array<i32>} : memref<1x8x128xf32, #tpu.memory_space<vmem>>, vector<1x8x128xf32>,
    return
  }
  func.func @transform_0(%arg0: i32) -> (i32, i32, i32) {
    %c0_i32 = arith.constant 0 : i32
    %c0_i32_0 = arith.constant 0 : i32
    %c0_i32_1 = arith.constant 0 : i32
    return %arg0, %c0_i32, %c0_i32_0 : i32, i32, i32
  }
  func.func @transform_1(%arg0: i32) -> (i32, i32, i32) {
    %c0_i32 = arith.constant 0 : i32
    %c0_i32_0 = arith.constant 0 : i32
    %c0_i32_1 = arith.constant 0 : i32
    return %arg0, %c0_i32, %c0_i32_0 : i32, i32, i32
  }
  func.func @transform_2(%arg0: i32) -> (i32, i32) {
    %c0_i32 = arith.constant 0 : i32
    %c0_i32_0 = arith.constant 0 : i32
    %c0_i32_1 = arith.constant 0 : i32
    return %c0_i32, %c0_i32_0 : i32, i32
  }
  func.func @transform_3(%arg0: i32) -> (i32, i32) {
    %c0_i32 = arith.constant 0 : i32
    %c0_i32_0 = arith.constant 0 : i32
    %c0_i32_1 = arith.constant 0 : i32
    return %c0_i32, %c0_i32_0 : i32, i32
  }
  func.func @transform_4(%arg0: i32) -> (i32, i32) {
    %c0_i32 = arith.constant 0 : i32
    %c0_i32_0 = arith.constant 0 : i32
    %c0_i32_1 = arith.constant 0 : i32
    return %c0_i32, %c0_i32_0 : i32, i32
  }
  func.func @transform_5(%arg0: i32) -> (i32, i32) {
    %c0_i32 = arith.constant 0 : i32
    %c0_i32_0 = arith.constant 0 : i32
    %c0_i32_1 = arith.constant 0 : i32
    return %c0_i32, %c0_i32_0 : i32, i32
  }
  func.func @transform_6(%arg0: i32) -> (i32, i32, i32) {
    %c0_i32 = arith.constant 0 : i32
    %c0_i32_0 = arith.constant 0 : i32
    %c0_i32_1 = arith.constant 0 : i32
    return %arg0, %c0_i32, %c0_i32_0 : i32, i32, i32
  }
}

</mosaic_0001>

<bundles_post_ra>
// kernel: tpu_custom_call.1
= control target key start
LH: loop header
LB: loop body
LE: loop exit
PB: predicated region body
PF: predicated region fallthrough
CT: control target
= control target key end

     0   :  { %11 = vsyncpa [#allocation3], 0  ;;  %s776_s0 = inlined_call_operand.hbm [shape: f32[1,8,8], index: 0, kind: input, shape index: {}]   ;;  %s777_s1 = inlined_call_operand.hbm [shape: f32[1,8,128], index: 1, kind: input, shape index: {}]   ;;  %s778_s2 = inlined_call_operand.hbm [shape: f32[128,128], index: 2, kind: input, shape index: {}]   ;;  %s779_s3 = inlined_call_operand.vmem [shape: f32[1,128], index: 3, kind: input, shape index: {}]   ;;  %s780_s4 = inlined_call_operand.hbm [shape: f32[128,128], index: 4, kind: input, shape index: {}]   ;;  %s781_s5 = inlined_call_operand.vmem [shape: f32[1,128], index: 5, kind: input, shape index: {}]   ;;  %s782_s6 = inlined_call_operand.hbm [shape: f32[1,8,128], index: 6, kind: output, shape index: {}]  }
   0x1   :  { %12 = vsyncpa [#allocation6], 0 }
   0x2   :  { %13 = vsyncpa [#allocation9], 0 }
   0x3   :  { %14 = vsyncpa [#allocation4], 0  ;;  %s667_s21 = smov [#allocation5]   ;;  %s668_s23 = smov [#allocation2]  }
   0x4   :  { %s31_s22 = sshll.u32 %s667_s21, 4  ;;  %s21_s24 = sshll.u32 %s668_s23, 4  ;;  %s32_s22 = int_to_ptr.vmem [resolvable:$true] %s31_s22  ;;  %s22_s24 = int_to_ptr.vmem [resolvable:$true] %s21_s24 }
   0x5   :  { %s567_s25 = scalar_lea.vmem %s32_s22, 128  ;;  %p572_p1 = scmp.lt.s32.totalorder %s32_s22, %s32_s22 }
   0x6   :  { %p568_p0 = scmp.ne.s32.totalorder %s32_s22, %s567_s25  ;;  %p573_p2 = scmp.lt.s32.totalorder %s567_s25, %s567_s25 }
   0x8   :  { %p574_p3 = por %p573_p2, %p572_p1 }
   0xa   :  { %p575_p4 = pnand %p574_p3, %p568_p0 }
   0xc   :  { %578 = shalt.err (!%p575_p4)
}
   0xd   :  { %34 = dma.hbm_to_vmem [thread:$0]  %s777_s1, 128, %s32_s22, [#allocation6]  }
   0xe   :  { %s587_s28 = scalar_lea.vmem %s22_s24, 128  ;;  %p592_p6 = scmp.lt.s32.totalorder %s22_s24, %s22_s24 }
   0xf   :  { %p588_p5 = scmp.ne.s32.totalorder %s22_s24, %s587_s28  ;;  %p593_p7 = scmp.lt.s32.totalorder %s587_s28, %s587_s28 }
  0x11   :  { %p594_p8 = por %p593_p7, %p592_p6 }
  0x13   :  { %p595_p9 = pnand %p594_p8, %p588_p5 }
  0x15   :  { %598 = shalt.err (!%p595_p9)
}
  0x16   :  { %24 = dma.hbm_to_vmem [thread:$0]  %s776_s0, 128, %s22_s24, [#allocation3]  }
  0x17   :  { %s669_s7 = smov [#allocation7]  }
  0x18   :  { %s40_s8 = sshll.u32 %s669_s7, 4  ;;  %s41_s8 = int_to_ptr.vmem [resolvable:$true] %s40_s8 }
  0x19   :  { %s607_s9 = scalar_lea.vmem %s41_s8, 2048  ;;  %p612_p11 = scmp.lt.s32.totalorder %s41_s8, %s41_s8 }
  0x1a   :  { %p608_p10 = scmp.ne.s32.totalorder %s41_s8, %s607_s9  ;;  %p613_p12 = scmp.lt.s32.totalorder %s607_s9, %s607_s9 }
  0x1c   :  { %p614_p13 = por %p613_p12, %p612_p11 }
  0x1e   :  { %p615_p0 = pnand %p614_p13, %p608_p10 }
  0x20   :  { %618 = shalt.err (!%p615_p0)
}
  0x21   :  { %s670_s1 = smov 128   ;;  %s671_s10 = smov 8  }
  0x22   :  { %46 = dma.hbm_to_vmem [thread:$0]  %s778_s2, 2048, %s41_s8, [#allocation6], %s670_s1, %s670_s1, %s671_s10  }
  0x23   :  { %s672_s13 = smov [#allocation8]  }
  0x24   :  { %s54_s14 = sshll.u32 %s672_s13, 4  ;;  %s55_s14 = int_to_ptr.vmem [resolvable:$true] %s54_s14 }
  0x25   :  { %s627_s0 = scalar_lea.vmem %s55_s14, 2048  ;;  %p632_p2 = scmp.lt.s32.totalorder %s55_s14, %s55_s14 }
  0x26   :  { %p628_p1 = scmp.ne.s32.totalorder %s55_s14, %s627_s0  ;;  %p633_p3 = scmp.lt.s32.totalorder %s627_s0, %s627_s0 }
  0x28   :  { %p634_p4 = por %p633_p3, %p632_p2 }
  0x2a   :  { %p635_p5 = pnand %p634_p4, %p628_p1 }
  0x2c   :  { %638 = shalt.err (!%p635_p5)
}
  0x2d   :  { %60 = dma.hbm_to_vmem [thread:$0]  %s780_s4, 2048, %s55_s14, [#allocation9], %s670_s1, %s670_s1, %s671_s10  }
  0x2e   :  { %659 = dma.done.wait [#allocation3], 128  }
  0x2f   :  { %660 = vsyncadd [#allocation3], 4294967168 }
  0x30   :  { %661 = dma.done.wait [#allocation6], 2176  }
  0x31   :  { %662 = vsyncadd [#allocation6], 4294965120 }
  0x32   :  { %663 = dma.done.wait [#allocation9], 2048  }
  0x33   :  { %664 = vsyncadd [#allocation9], 4294965248  ;;  %v673_v0 = vmov 0.0   ;;  %vm674_vm0 = vmmov 0   ;;  %vm79_vm1 = vcmask 64512   ;;  %v76_v1 = vld [vmem:[#allocation5] sm:$0xff] }
  0x34   :  { %470 = vmatprep.subr.mxu1 %v673_v0  ;;  %472 = vmatprep.mubr.msk.f32.mxu1 %vm674_vm0, %v673_v0  ;;  %v75_v2 = vld [vmem:[#allocation2] sm:$0xff]  ;;  %v168_v3 = vld [vmem:[#allocation7 + $0x78] sm:$0xff]  ;;  %v166_v5 = vld [vmem:[#allocation7 + $0x68] sm:$0xff]  ;;  %s675_s18 = smov [#allocation10]  }
  0x35   :  { %510 = vmatprep.subr.mxu0 %v673_v0  ;;  %512 = vmatprep.mubr.msk.f32.mxu0 %vm674_vm0, %v673_v0  ;;  %v167_v4 = vld [vmem:[#allocation7 + $0x70] sm:$0xff]  ;;  %v165_v6 = vld [vmem:[#allocation7 + $0x60] sm:$0xff]  ;;  %v164_v7 = vld [vmem:[#allocation7 + $0x58] sm:$0xff]  ;;  %s417_s19 = sshll.u32 %s675_s18, 4  ;;  %s418_s19 = int_to_ptr.vmem [resolvable:$true] %s417_s19 }
  0x36   :  { %471 = vmatpush3.msra.mxu1 %v76_v1  ;;  %v163_v8 = vld [vmem:[#allocation7 + $0x50] sm:$0xff]  ;;  %v162_v9 = vld [vmem:[#allocation7 + $0x48] sm:$0xff]  ;;  %v161_v10 = vld [vmem:[#allocation7 + $0x40] sm:$0xff]  ;;  %s639_s20 = scalar_lea.vmem %s418_s19, 128  ;;  %p644_p7 = scmp.lt.s32.totalorder %s418_s19, %s418_s19 }
  0x37   :  { %473 = vmatmul.mubr.msk.f32.vlgmr.msra.gmra.mxu1 %vm79_vm1, %v75_v2  ;;  %475 = vmatprep.subr.mxu1 %v673_v0  ;;  %v160_v11 = vld [vmem:[#allocation7 + $0x38] sm:$0xff]  ;;  %v159_v12 = vld [vmem:[#allocation7 + $0x30] sm:$0xff]  ;;  %v158_v13 = vld [vmem:[#allocation7 + $0x28] sm:$0xff]  ;;  %p640_p6 = scmp.ne.s32.totalorder %s418_s19, %s639_s20  ;;  %p645_p8 = scmp.lt.s32.totalorder %s639_s20, %s639_s20 }
  0x38   :  { %476 = vmatpush3.msra.mxu1 %v168_v3  ;;  %507 = vmatprep.mubr.msk.f32.mxu1 %vm674_vm0, %v673_v0  ;;  %v157_v14 = vld [vmem:[#allocation7 + $0x20] sm:$0xff]  ;;  %v156_v15 = vld [vmem:[#allocation7 + $0x18] sm:$0xff]  ;;  %v155_v16 = vld [vmem:[#allocation7 + $0x10] sm:$0xff] }
  0x39   :  { %477 = vmatprep.subr.mxu1 %v673_v0  ;;  %v154_v17 = vld [vmem:[#allocation7 + $0x8] sm:$0xff]  ;;  %v153_v18 = vld [vmem:[#allocation7] sm:$0xff]  ;;  %v429_v21 = vld [vmem:[%s779_s3] ss:$0 sm:$0xff]  ;;  %p646_p9 = por %p645_p8, %p644_p7 }
  0x3a   :  { %478 = vmatpush3.msra.mxu1 %v167_v4  ;;  %v262_v26 = vld [vmem:[#allocation8 + $0x78] sm:$0xff]  ;;  %v261_v27 = vld [vmem:[#allocation8 + $0x70] sm:$0xff]  ;;  %v260_v28 = vld [vmem:[#allocation8 + $0x68] sm:$0xff] }
  0x3b   :  { %479 = vmatprep.subr.mxu1 %v673_v0  ;;  %v259_v29 = vld [vmem:[#allocation8 + $0x60] sm:$0xff]  ;;  %v258_v30 = vld [vmem:[#allocation8 + $0x58] sm:$0xff]  ;;  %v257_v31 = vld [vmem:[#allocation8 + $0x50] sm:$0xff]  ;;  %p647_p10 = pnand %p646_p9, %p640_p6 }
  0x3c   :  { %480 = vmatpush3.msra.mxu1 %v166_v5  ;;  %v256_v32 = vld [vmem:[#allocation8 + $0x48] sm:$0xff]  ;;  %v255_v33 = vld [vmem:[#allocation8 + $0x40] sm:$0xff]  ;;  %v254_v34 = vld [vmem:[#allocation8 + $0x38] sm:$0xff] }
  0x3d   :  { %481 = vmatprep.subr.mxu1 %v673_v0  ;;  %v253_v35 = vld [vmem:[#allocation8 + $0x30] sm:$0xff]  ;;  %v252_v36 = vld [vmem:[#allocation8 + $0x28] sm:$0xff]  ;;  %v251_v37 = vld [vmem:[#allocation8 + $0x20] sm:$0xff] }
  0x3e   :  { %482 = vmatpush3.msra.mxu1 %v165_v6  ;;  %v250_v38 = vld [vmem:[#allocation8 + $0x18] sm:$0xff]  ;;  %v249_v39 = vld [vmem:[#allocation8 + $0x10] sm:$0xff]  ;;  %v248_v40 = vld [vmem:[#allocation8 + $0x8] sm:$0xff] }
  0x3f   :  { %483 = vmatprep.subr.mxu1 %v673_v0  ;;  %v247_v41 = vld [vmem:[#allocation8] sm:$0xff]  ;;  %v431_v44 = vld [vmem:[%s781_s5] ss:$0 sm:$0xff] }
  0x40   :  { %484 = vmatpush3.msra.mxu1 %v164_v7 }
  0x41   :  { %485 = vmatprep.subr.mxu1 %v673_v0 }
  0x42   :  { %486 = vmatpush3.msra.mxu1 %v163_v8 }
  0x43   :  { %487 = vmatprep.subr.mxu1 %v673_v0 }
  0x44   :  { %488 = vmatpush3.msra.mxu1 %v162_v9 }
  0x45   :  { %489 = vmatprep.subr.mxu1 %v673_v0 }
  0x46   :  { %490 = vmatpush3.msra.mxu1 %v161_v10 }
  0x47   :  { %491 = vmatprep.subr.mxu1 %v673_v0 }
  0x48   :  { %492 = vmatpush3.msra.mxu1 %v160_v11 }
  0x49   :  { %493 = vmatprep.subr.mxu1 %v673_v0 }
  0x4a   :  { %494 = vmatpush3.msra.mxu1 %v159_v12 }
  0x4b   :  { %495 = vmatprep.subr.mxu1 %v673_v0 }
  0x4c   :  { %496 = vmatpush3.msra.mxu1 %v158_v13 }
  0x4d   :  { %497 = vmatprep.subr.mxu1 %v673_v0 }
  0x4e   :  { %498 = vmatpush3.msra.mxu1 %v157_v14 }
  0x4f   :  { %499 = vmatprep.subr.mxu1 %v673_v0 }
  0x50   :  { %500 = vmatpush3.msra.mxu1 %v156_v15 }
  0x51   :  { %501 = vmatprep.subr.mxu1 %v673_v0 }
  0x52   :  { %502 = vmatpush3.msra.mxu1 %v155_v16 }
  0x53   :  { %503 = vmatprep.subr.mxu1 %v673_v0 }
  0x54   :  { %504 = vmatpush3.msra.mxu1 %v154_v17 }
  0x55   :  { %505 = vmatprep.subr.mxu1 %v673_v0 }
  0x56   :  { %506 = vmatpush3.msra.mxu1 %v153_v18 }
  0xf7   :  { %v149_v19 = vpop.f32.mrf.mxu1 }
  0xf8   :  { %508 = vmatmul.mubr.f32.vlgmr.msra.gmra.mxu1 %v149_v19 }
  0xf9   :  { %v474_v20 = vpop.f32.mrf.mxu1 }
 0x1b8   :  { %v235_v22 = vpop.f32.mrf.mxu1 }
 0x1b9   :  { %v245_v23 = vadd.f32 %v429_v21, %v235_v22 }
 0x1ba   :  { %v509_v24 = vpop.f32.mrf.mxu1 }
 0x1bb   :  { %v246_v25 = vmax.f32 %v245_v23, 0.0 }
 0x1bd   :  { %511 = vmatpush3.msra.mxu0 %v246_v25 }
 0x1be   :  { %513 = vmatmul.mubr.msk.f32.vlgmr.msra.gmra.mxu0 %vm79_vm1, %v75_v2  ;;  %515 = vmatprep.subr.mxu0 %v673_v0 }
 0x1bf   :  { %516 = vmatpush3.msra.mxu0 %v262_v26  ;;  %547 = vmatprep.mubr.msk.f32.mxu0 %vm674_vm0, %v673_v0 }
 0x1c0   :  { %517 = vmatprep.subr.mxu0 %v673_v0 }
 0x1c1   :  { %518 = vmatpush3.msra.mxu0 %v261_v27 }
 0x1c2   :  { %519 = vmatprep.subr.mxu0 %v673_v0 }
 0x1c3   :  { %520 = vmatpush3.msra.mxu0 %v260_v28 }
 0x1c4   :  { %521 = vmatprep.subr.mxu0 %v673_v0 }
 0x1c5   :  { %522 = vmatpush3.msra.mxu0 %v259_v29 }
 0x1c6   :  { %523 = vmatprep.subr.mxu0 %v673_v0 }
 0x1c7   :  { %524 = vmatpush3.msra.mxu0 %v258_v30 }
 0x1c8   :  { %525 = vmatprep.subr.mxu0 %v673_v0 }
 0x1c9   :  { %526 = vmatpush3.msra.mxu0 %v257_v31 }
 0x1ca   :  { %527 = vmatprep.subr.mxu0 %v673_v0 }
 0x1cb   :  { %528 = vmatpush3.msra.mxu0 %v256_v32 }
 0x1cc   :  { %529 = vmatprep.subr.mxu0 %v673_v0 }
 0x1cd   :  { %530 = vmatpush3.msra.mxu0 %v255_v33 }
 0x1ce   :  { %531 = vmatprep.subr.mxu0 %v673_v0 }
 0x1cf   :  { %532 = vmatpush3.msra.mxu0 %v254_v34 }
 0x1d0   :  { %533 = vmatprep.subr.mxu0 %v673_v0 }
 0x1d1   :  { %534 = vmatpush3.msra.mxu0 %v253_v35 }
 0x1d2   :  { %535 = vmatprep.subr.mxu0 %v673_v0 }
 0x1d3   :  { %536 = vmatpush3.msra.mxu0 %v252_v36 }
 0x1d4   :  { %537 = vmatprep.subr.mxu0 %v673_v0 }
 0x1d5   :  { %538 = vmatpush3.msra.mxu0 %v251_v37 }
 0x1d6   :  { %539 = vmatprep.subr.mxu0 %v673_v0 }
 0x1d7   :  { %540 = vmatpush3.msra.mxu0 %v250_v38 }
 0x1d8   :  { %541 = vmatprep.subr.mxu0 %v673_v0 }
 0x1d9   :  { %542 = vmatpush3.msra.mxu0 %v249_v39 }
 0x1da   :  { %543 = vmatprep.subr.mxu0 %v673_v0 }
 0x1db   :  { %544 = vmatpush3.msra.mxu0 %v248_v40 }
 0x1dc   :  { %545 = vmatprep.subr.mxu0 %v673_v0 }
 0x1dd   :  { %546 = vmatpush3.msra.mxu0 %v247_v41 }
 0x27e   :  { %v329_v42 = vpop.f32.mrf.mxu0 }
 0x27f   :  { %548 = vmatmul.mubr.f32.vlgmr.msra.gmra.mxu0 %v329_v42 }
 0x280   :  { %v514_v43 = vpop.f32.mrf.mxu0 }
 0x33f   :  { %v399_v45 = vpop.f32.mrf.mxu0 }
 0x340   :  { %v409_v46 = vadd.f32 %v431_v44, %v399_v45 }
 0x341   :  { %v549_v47 = vpop.f32.mrf.mxu0 }
 0x342   :  { %410 = vst [vmem:[#allocation10] sm:$0xff] %v409_v46 }
 0x343   :  { %650 = shalt.err (!%p647_p10)
}
 0x344   :  { %420 = dma.vmem_to_hbm [thread:$0]  %s418_s19, 128, %s782_s6, [#allocation4]  }
 0x345   :  { %665 = dma.done.wait [#allocation4], 128  }
 0x346   :  { %666 = vsyncadd [#allocation4], 4294967168 }
 0x347   :  { %424 = vsyncpa [#allocation3], 1 }
 0x348   :  { %425 = vsyncpa [#allocation6], 1 }
 0x349   :  { %426 = vsyncpa [#allocation9], 1 }
 0x34a   :  { %427 = vsyncpa [#allocation4], 1 }

</bundles_post_ra>
